<compile_context>
chip_gen: v5e
topology: v5e:2x2
jax: 0.10.0
libtpu: 0.0.40
codegen_flags: <defaults>
</compile_context>

<pallas_src>
import math

import jax
import jax.numpy as jnp
from jax.experimental import pallas as pl
from jax.experimental.pallas import tpu as pltpu


def _round_up(v, m):
    return ((v + m - 1) // m) * m


def dqn_kernel(x_ref, w1_ref, b1_ref, w2_ref, b2_ref, w3_ref, b3_ref, o_ref):
    a = o_ref.shape[-1]  # true (unpadded) action dim
    # layer 1: cast x to bf16 in-kernel (free on the VPU), MXU matmul, f32 accumulation
    x = x_ref[...].astype(jnp.bfloat16)
    h1 = jnp.dot(x, w1_ref[...], preferred_element_type=jnp.float32)
    h1 = jnp.maximum(h1 + b1_ref[...], 0.0)
    # layer 2
    h2 = jnp.dot(h1.astype(jnp.bfloat16), w2_ref[...], preferred_element_type=jnp.float32)
    h2 = jnp.maximum(h2 + b2_ref[...], 0.0)
    # layer 3: action dim padded to 128 lanes inside the kernel only; padded bias columns hold
    # -1e30 so exp() underflows to exactly 0 and the softmax denominator is untouched.
    logits = jnp.dot(h2.astype(jnp.bfloat16), w3_ref[...], preferred_element_type=jnp.float32)
    logits = logits + b3_ref[...]
    # numerically stable softmax in f32; exact normalization (explicit divide)
    m = jnp.max(logits, axis=-1, keepdims=True)
    e = jnp.exp(logits - m)
    denom = jnp.sum(e, axis=-1, keepdims=True)
    probs = e / denom
    # store only the real action lanes (masked vst; tiny HBM writeback)
    o_ref[...] = probs[:, :a].astype(o_ref.dtype)


def dqn_forward(x, params, *, tb_max=4096):
    """Forward pass. x: (B, state_size) f32; params in f32 as produced by init_dqn_params."""
    w1, b1, w2, b2, w3, b3 = params
    B, S = x.shape
    A = w3.shape[1]

    # Batch tiling: round to 16 sublanes (bf16 intermediates pack 16 rows/vreg) and make sure
    # there are at least 2 grid steps when the batch allows it (v7x megacore sharding).
    B16 = _round_up(B, 16)
    if B16 >= 32:
        TB = min(tb_max, _round_up((B16 + 1) // 2, 16))
    else:
        TB = B16
    B_pad = _round_up(B16, TB)

    # Lane-padded action dim used only for the in-kernel matmul/softmax; HBM output stays at A.
    A_pad = _round_up(A, 128)

    x_p = x if B_pad == B else jnp.pad(x, ((0, B_pad - B), (0, 0)))

    # bf16 MXU weights; biases stay f32 (added post-accumulation).
    w1_bf = w1.astype(jnp.bfloat16)
    w2_bf = w2.astype(jnp.bfloat16)
    w3_bf = jnp.pad(w3, ((0, 0), (0, A_pad - A))).astype(jnp.bfloat16)
    b1_f = b1.astype(jnp.float32)
    b2_f = b2.astype(jnp.float32)
    # Padded logit columns pushed to a huge negative value -> exp() == 0 -> softmax denom untouched.
    b3_p = jnp.pad(b3.astype(jnp.float32), ((0, 0), (0, A_pad - A)), constant_values=-1e30)

    def resident(a):
        # Block index never changes across the grid -> DMA'd once, stays resident in VMEM.
        return pl.BlockSpec(a.shape, lambda i: (0, 0))

    flops = 2 * B_pad * (S * 128 + 128 * 256 + 256 * A_pad)
    bytes_accessed = (
        B_pad * S * 4 + B_pad * A * 4  # x in (f32) + probs out (f32)
        + (w1_bf.size + w2_bf.size + w3_bf.size) * 2
        + (b1_f.size + b2_f.size + b3_p.size) * 4
    )
    cost = pl.CostEstimate(flops=flops,
                           transcendentals=B_pad * A_pad,
                           bytes_accessed=bytes_accessed)

    out = pl.pallas_call(
        dqn_kernel,
        out_shape=jax.ShapeDtypeStruct((B_pad, A), jnp.float32),
        grid=(B_pad // TB,),
        in_specs=[pl.BlockSpec((TB, S), lambda i: (i, 0)),
                  resident(w1_bf), resident(b1_f),
                  resident(w2_bf), resident(b2_f),
                  resident(w3_bf), resident(b3_p)],
        out_specs=pl.BlockSpec((TB, A), lambda i: (i, 0)),
        compiler_params=pltpu.CompilerParams(
            dimension_semantics=("parallel",),
            vmem_limit_bytes=32 * 1024 * 1024),
        cost_estimate=cost,
    )(x_p, w1_bf, b1_f, w2_bf, b2_f, w3_bf, b3_p)

    return out if B_pad == B else out[:B]


def init_dqn_params(key, state_size, action_size):
    """Deterministic PyTorch-style (uniform +/- 1/sqrt(fan_in)) initialization (f32)."""
    dims = [(state_size, 128), (128, 256), (256, action_size)]
    params = []
    for fan_in, fan_out in dims:
        kw, kb, key = jax.random.split(key, 3)
        bound = 1.0 / math.sqrt(fan_in)
        w = jax.random.uniform(kw, (fan_in, fan_out), jnp.float32, -bound, bound)
        b = jax.random.uniform(kb, (1, fan_out), jnp.float32, -bound, bound)
        params += [w, b]
    return tuple(params)


def dqn_reference(x, params):
    w1, b1, w2, b2, w3, b3 = params
    h1 = jax.nn.relu(x @ w1 + b1)
    h2 = jax.nn.relu(h1 @ w2 + b2)
    return jax.nn.softmax(h2 @ w3 + b3, axis=-1)


if __name__ == "__main__":
    key = jax.random.PRNGKey(0)
    kx, kp = jax.random.split(key)

    batch = 40          # deliberately not a multiple of the batch tile -> exercises padding
    state_size = 16
    action_size = 8

    x = jax.random.normal(kx, (batch, state_size), jnp.float32)
    params = init_dqn_params(kp, state_size, action_size)
    ref = dqn_reference(x, params)

    # Small tb_max so the test exercises a multi-step grid; production callers use the default.
    out_small = dqn_forward(x, params, tb_max=16)
    jax.block_until_ready(out_small)
    # Default tile path (2 grid steps of 32 rows for this batch).
    out_default = dqn_forward(x, params)
    jax.block_until_ready(out_default)

    for out in (out_small, out_default):
        assert out.shape == (batch, action_size)
        # bf16 weights on the MXU => looser tolerance than the pure-f32 reference
        assert jnp.allclose(out, ref, atol=5e-3, rtol=5e-3), "mismatch vs JAX reference"
        assert jnp.allclose(jnp.sum(out, axis=-1), 1.0, atol=1e-4), "softmax rows must sum to 1"

    print("KERNEL_OK")
</pallas_src>

<mosaic_0001>
module attributes {stable_mosaic.version = 11 : i64} {
  func.func @dqn_kernel(%arg0: i32, %arg1: memref<16x16xf32, #tpu.memory_space<vmem>>, %arg2: memref<16x128xbf16, #tpu.memory_space<vmem>>, %arg3: memref<1x128xf32, #tpu.memory_space<vmem>>, %arg4: memref<128x256xbf16, #tpu.memory_space<vmem>>, %arg5: memref<1x256xf32, #tpu.memory_space<vmem>>, %arg6: memref<256x128xbf16, #tpu.memory_space<vmem>>, %arg7: memref<1x128xf32, #tpu.memory_space<vmem>>, %arg8: memref<16x8xf32, #tpu.memory_space<vmem>>) attributes {dimension_semantics = [#tpu.dimension_semantics<parallel>], iteration_bounds = array<i64: 3>, scalar_prefetch = 0 : i64, scratch_operands = 0 : i64, tpu.core_type = #tpu.core_type<tc>, window_params = [{transform_indices = @transform_0, window_bounds = array<i64: 16, 16>}, {pipeline_mode = #tpu.pipeline_mode<synchronous>, transform_indices = @transform_1, window_bounds = array<i64: 16, 128>}, {pipeline_mode = #tpu.pipeline_mode<synchronous>, transform_indices = @transform_2, window_bounds = array<i64: 1, 128>}, {pipeline_mode = #tpu.pipeline_mode<synchronous>, transform_indices = @transform_3, window_bounds = array<i64: 128, 256>}, {pipeline_mode = #tpu.pipeline_mode<synchronous>, transform_indices = @transform_4, window_bounds = array<i64: 1, 256>}, {pipeline_mode = #tpu.pipeline_mode<synchronous>, transform_indices = @transform_5, window_bounds = array<i64: 256, 128>}, {pipeline_mode = #tpu.pipeline_mode<synchronous>, transform_indices = @transform_6, window_bounds = array<i64: 1, 128>}, {transform_indices = @transform_7, window_bounds = array<i64: 16, 8>}]} {
    %c0 = arith.constant 0 : index
    %c0_0 = arith.constant 0 : index
    %0 = vector.load %arg1[%c0, %c0_0] : memref<16x16xf32, #tpu.memory_space<vmem>>, vector<16x16xf32>
    %1 = arith.truncf %0 : vector<16x16xf32> to vector<16x16xbf16>
    %c0_1 = arith.constant 0 : index
    %c0_2 = arith.constant 0 : index
    %2 = vector.load %arg2[%c0_1, %c0_2] : memref<16x128xbf16, #tpu.memory_space<vmem>>, vector<16x128xbf16>
    %cst = arith.constant dense<0.000000e+00> : vector<16x128xf32>
    %3 = tpu.matmul %1, %2, %cst {dimension_numbers = #tpu.dot_dimension_numbers<[1], [0], [0], [1], [0, 0, 1, 1], [], []>} : vector<16x16xbf16>, vector<16x128xbf16>, vector<16x128xf32> -> vector<16x128xf32>
    %c0_3 = arith.constant 0 : index
    %c0_4 = arith.constant 0 : index
    %4 = vector.load %arg3[%c0_3, %c0_4] : memref<1x128xf32, #tpu.memory_space<vmem>>, vector<1x128xf32>
    %5 = vector.broadcast %4 : vector<1x128xf32> to vector<16x128xf32>
    %6 = arith.addf %3, %5 : vector<16x128xf32>
    %cst_5 = arith.constant 0.000000e+00 : f32
    %7 = vector.broadcast %cst_5 : f32 to vector<16x128xf32>
    %8 = arith.maximumf %6, %7 : vector<16x128xf32>
    %9 = arith.truncf %8 : vector<16x128xf32> to vector<16x128xbf16>
    %c0_6 = arith.constant 0 : index
    %c0_7 = arith.constant 0 : index
    %10 = vector.load %arg4[%c0_6, %c0_7] : memref<128x256xbf16, #tpu.memory_space<vmem>>, vector<128x256xbf16>
    %cst_8 = arith.constant dense<0.000000e+00> : vector<16x256xf32>
    %11 = tpu.matmul %9, %10, %cst_8 {dimension_numbers = #tpu.dot_dimension_numbers<[1], [0], [0], [1], [0, 0, 1, 1], [], []>} : vector<16x128xbf16>, vector<128x256xbf16>, vector<16x256xf32> -> vector<16x256xf32>
    %c0_9 = arith.constant 0 : index
    %c0_10 = arith.constant 0 : index
    %12 = vector.load %arg5[%c0_9, %c0_10] : memref<1x256xf32, #tpu.memory_space<vmem>>, vector<1x256xf32>
    %13 = vector.broadcast %12 : vector<1x256xf32> to vector<16x256xf32>
    %14 = arith.addf %11, %13 : vector<16x256xf32>
    %cst_11 = arith.constant 0.000000e+00 : f32
    %15 = vector.broadcast %cst_11 : f32 to vector<16x256xf32>
    %16 = arith.maximumf %14, %15 : vector<16x256xf32>
    %17 = arith.truncf %16 : vector<16x256xf32> to vector<16x256xbf16>
    %c0_12 = arith.constant 0 : index
    %c0_13 = arith.constant 0 : index
    %18 = vector.load %arg6[%c0_12, %c0_13] : memref<256x128xbf16, #tpu.memory_space<vmem>>, vector<256x128xbf16>
    %cst_14 = arith.constant dense<0.000000e+00> : vector<16x128xf32>
    %19 = tpu.matmul %17, %18, %cst_14 {dimension_numbers = #tpu.dot_dimension_numbers<[1], [0], [0], [1], [0, 0, 1, 1], [], []>} : vector<16x256xbf16>, vector<256x128xbf16>, vector<16x128xf32> -> vector<16x128xf32>
    %c0_15 = arith.constant 0 : index
    %c0_16 = arith.constant 0 : index
    %20 = vector.load %arg7[%c0_15, %c0_16] : memref<1x128xf32, #tpu.memory_space<vmem>>, vector<1x128xf32>
    %21 = vector.broadcast %20 : vector<1x128xf32> to vector<16x128xf32>
    %22 = arith.addf %19, %21 : vector<16x128xf32>
    %cst_17 = arith.constant dense<0xFF800000> : vector<16xf32>
    %23 = vector.multi_reduction <maximumf>, %22, %cst_17 [1] : vector<16x128xf32> to vector<16xf32>
    %24 = vector.shape_cast %23 : vector<16xf32> to vector<16x1xf32>
    %25 = vector.broadcast %24 : vector<16x1xf32> to vector<16x128xf32>
    %26 = arith.subf %22, %25 : vector<16x128xf32>
    %27 = math.exp %26 : vector<16x128xf32>
    %cst_18 = arith.constant dense<0.000000e+00> : vector<16xf32>
    %28 = vector.multi_reduction <add>, %27, %cst_18 [1] : vector<16x128xf32> to vector<16xf32>
    %29 = vector.shape_cast %28 : vector<16xf32> to vector<16x1xf32>
    %30 = vector.broadcast %29 : vector<16x1xf32> to vector<16x128xf32>
    %31 = arith.divf %27, %30 : vector<16x128xf32>
    %32 = vector.extract_strided_slice %31 {offsets = [0, 0], sizes = [16, 8], strides = [1, 1]} : vector<16x128xf32> to vector<16x8xf32>
    %c0_19 = arith.constant 0 : index
    %c0_20 = arith.constant 0 : index
    %33 = vector.load %arg8[%c0_19, %c0_20] : memref<16x8xf32, #tpu.memory_space<vmem>>, vector<16x8xf32>
    tpu.vector_store %arg8[%c0_19, %c0_20], %32 {strides = array<i32>} : memref<16x8xf32, #tpu.memory_space<vmem>>, vector<16x8xf32>,
    return
  }
  func.func @transform_0(%arg0: i32) -> (i32, i32) {
    %c0_i32 = arith.constant 0 : i32
    %c0_i32_0 = arith.constant 0 : i32
    return %arg0, %c0_i32 : i32, i32
  }
  func.func @transform_1(%arg0: i32) -> (i32, i32) {
    %c0_i32 = arith.constant 0 : i32
    %c0_i32_0 = arith.constant 0 : i32
    %c0_i32_1 = arith.constant 0 : i32
    return %c0_i32, %c0_i32_0 : i32, i32
  }
  func.func @transform_2(%arg0: i32) -> (i32, i32) {
    %c0_i32 = arith.constant 0 : i32
    %c0_i32_0 = arith.constant 0 : i32
    %c0_i32_1 = arith.constant 0 : i32
    return %c0_i32, %c0_i32_0 : i32, i32
  }
  func.func @transform_3(%arg0: i32) -> (i32, i32) {
    %c0_i32 = arith.constant 0 : i32
    %c0_i32_0 = arith.constant 0 : i32
    %c0_i32_1 = arith.constant 0 : i32
    return %c0_i32, %c0_i32_0 : i32, i32
  }
  func.func @transform_4(%arg0: i32) -> (i32, i32) {
    %c0_i32 = arith.constant 0 : i32
    %c0_i32_0 = arith.constant 0 : i32
    %c0_i32_1 = arith.constant 0 : i32
    return %c0_i32, %c0_i32_0 : i32, i32
  }
  func.func @transform_5(%arg0: i32) -> (i32, i32) {
    %c0_i32 = arith.constant 0 : i32
    %c0_i32_0 = arith.constant 0 : i32
    %c0_i32_1 = arith.constant 0 : i32
    return %c0_i32, %c0_i32_0 : i32, i32
  }
  func.func @transform_6(%arg0: i32) -> (i32, i32) {
    %c0_i32 = arith.constant 0 : i32
    %c0_i32_0 = arith.constant 0 : i32
    %c0_i32_1 = arith.constant 0 : i32
    return %c0_i32, %c0_i32_0 : i32, i32
  }
  func.func @transform_7(%arg0: i32) -> (i32, i32) {
    %c0_i32 = arith.constant 0 : i32
    %c0_i32_0 = arith.constant 0 : i32
    return %arg0, %c0_i32 : i32, i32
  }
}

</mosaic_0001>

<bundles_post_ra>
// kernel: tpu_custom_call.1
= control target key start
LH: loop header
LB: loop body
LE: loop exit
PB: predicated region body
PF: predicated region fallthrough
CT: control target
= control target key end

     0   :  { %12 = vsyncpa [#allocation3], 0  ;;  %s1186_s0 = inlined_call_operand.vmem [shape: f32[48,16], index: 0, kind: input, shape index: {}]   ;;  %s1187_s1 = inlined_call_operand.vmem [shape: bf16[16,128], index: 1, kind: input, shape index: {}]   ;;  %s1188_s2 = inlined_call_operand.vmem [shape: f32[1,128], index: 2, kind: input, shape index: {}]   ;;  %s1189_s3 = inlined_call_operand.hbm [shape: bf16[128,256], index: 3, kind: input, shape index: {}]   ;;  %s1190_s4 = inlined_call_operand.vmem [shape: f32[1,256], index: 4, kind: input, shape index: {}]   ;;  %s1191_s5 = inlined_call_operand.hbm [shape: bf16[256,128], index: 5, kind: input, shape index: {}]   ;;  %s1192_s6 = inlined_call_operand.vmem [shape: f32[1,128], index: 6, kind: input, shape index: {}]   ;;  %s1193_s7 = inlined_call_operand.vmem [shape: f32[48,8], index: 7, kind: output, shape index: {}]  }
   0x1   :  { %13 = vsyncpa [#allocation5], 0  ;;  %s1120_s24 = smov 0  }
   0x2 LB: > { %s219_s27 = sshll.u32 %s1189_s3, 4  ;;  %s774_s28 = sadd.s32 4294967295, %s1072_s24   ;;  %s1072_s24 = sphi %s1120_s24, %s19_s24   ;;  %s220_s27 = int_to_ptr.hbm [resolvable:$true] %s219_s27 }
   0x3   : > { %p776_p0 = scmp.ge.s32.totalorder %s1072_s24, 1  ;;  %p202_p1 = scmp.lt.s32.totalorder %s1072_s24, 4 }
   0x4   : > { %p1131_p2 = scmp.eq.s32.totalorder %s774_s28, 0  ;;  %s1074_s8 = smov [#allocation2]  }
   0x5   : > { %p1135_p3 = pnand %p776_p0, %p202_p1  ;;  %s221_s9 = sshll.u32 %s1074_s8, 4  ;;  %s222_s9 = int_to_ptr.vmem [resolvable:$true] %s221_s9 }
   0x6   : > { %s236_s12 = sshll.u32 %s1191_s5, 4  ;;  %s1075_s13 = smov [#allocation4]   ;;  %s237_s12 = int_to_ptr.hbm [resolvable:$true] %s236_s12 }
   0x7   : > { %p963_p4 = pneg %p1135_p3  ;;  %s238_s14 = sshll.u32 %s1075_s13, 4  ;;  %s239_s14 = int_to_ptr.vmem [resolvable:$true] %s238_s14 }
   0x8   : > { %s1076_s15 = smov 128   ;;  %s1077_s16 = smov 8  }
   0x9   : > { %p964_p5 = pnand %p1131_p2, %p963_p4  ;;  %s1078_s17 = smov 64  }
   0xa   : > { %s1079_s18 = smov 4   ;;  %266 = sbr.rel (%p1135_p3) target bundleno = 714 (0x2ca), region = 48 }
   0xb   : > { %966 = dma.hbm_to_vmem [thread:$0]  (!%p964_p5), %s220_s27, 2048, %s222_s9, [#allocation3], %s1076_s15, %s1076_s15, %s1077_s16  }
   0xc   : > { %969 = dma.hbm_to_vmem [thread:$0]  (!%p964_p5), %s237_s12, 2048, %s239_s14, [#allocation5], %s1078_s17, %s1078_s17, %s1079_s18  }
   0xf   : > { %1063 = dma.done.wait (%p1131_p2), [#allocation3], 2048  }
  0x10   : > { %1065 = vsyncadd (%p1131_p2), [#allocation3], 4294965248 }
  0x11   : > { %1067 = dma.done.wait (%p1131_p2), [#allocation5], 2048  }
  0x12   : > { %1069 = vsyncadd (%p1131_p2), [#allocation5], 4294965248  ;;  %s783_s19 = sshll.u32 %s774_s28, 1  ;;  %v922_v0 = vld [vmem:[%s1187_s1] sm:$0xff]  ;;  %vm332_vm0 = vcmask 130048   ;;  %v946_v52 = vld [vmem:[#allocation4 + $0x38] sm:$0xff] }
  0x13   : > { %p305_p6 = scmp.lt.s32.totalorder %s783_s19, 5  ;;  %v850_v4 = vld [vmem:[#allocation2 + $0x70] sm:$0xf]  ;;  %v938_v5 = vld [vmem:[#allocation2 + $0x74] sm:$0xf0]  ;;  %343 = vmatpush.bf16.msra.mxu0 %v922_v0  ;;  %621 = vmatpush.bf16.msra.mxu3 %v946_v52  ;;  %v944_v56 = vld [vmem:[#allocation4 + $0x28] sm:$0xff] }
  0x14   : > { %v937_v6 = vld [vmem:[#allocation2 + $0x74] sm:$0xf]  ;;  %v851_v7 = vor.u32 %v938_v5, %v850_v4  ;;  %v852_v8 = vld [vmem:[#allocation2 + $0x78] sm:$0xf0]  ;;  %v842_v9 = vld [vmem:[#allocation2 + $0x60] sm:$0xf] }
  0x15   : > { %s1197_s19 = smov (!%p305_p6, %s783_s19), 5  ;;  %v936_v10 = vld [vmem:[#allocation2 + $0x64] sm:$0xf0]  ;;  %v855_v11 = vor.u32 %v937_v6, %v852_v8  ;;  %v935_v12 = vld [vmem:[#allocation2 + $0x64] sm:$0xf]  ;;  %v954_v53 = vld [vmem:[#allocation4 + $0x78] sm:$0xff] }
  0x16   : > { %s784_s20 = sshll.u32 %s1197_s19, 3  ;;  %v844_v13 = vld [vmem:[#allocation2 + $0x68] sm:$0xf0]  ;;  %455 = vmatpush.bf16.msra.mxu1 %v851_v7  ;;  %v843_v14 = vor.u32 %v936_v10, %v842_v9  ;;  %v834_v16 = vld [vmem:[#allocation2 + $0x50] sm:$0xf]  ;;  %v943_v58 = vld [vmem:[#allocation4 + $0x20] sm:$0xff] }
  0x17   : > { %s308_s23 = scalar_lea.vmem %s1186_s0, %s784_s20  ;;  %469 = vmatpush.bf16.msra.mxu2 %v855_v11  ;;  %v847_v15 = vor.u32 %v935_v12, %v844_v13  ;;  %v934_v17 = vld [vmem:[#allocation2 + $0x54] sm:$0xf0]  ;;  %v933_v18 = vld [vmem:[#allocation2 + $0x54] sm:$0xf]  ;;  %v836_v19 = vld [vmem:[#allocation2 + $0x58] sm:$0xf0]  ;;  %635 = vmatpush.bf16.msrb.mxu0 %v954_v53  ;;  %s314_s12 = scalar_lea.vmem %s1193_s7, %s784_s20 }
  0x18   : > { %v317_v1 = vld [vmem:[%s308_s23] sm:$0xff]  ;;  %v318_v2 = vld [vmem:[%s308_s23 + $0x8] sm:$0xff]  ;;  %v835_v20 = vor.u32 %v934_v17, %v834_v16  ;;  %v839_v21 = vor.u32 %v933_v18, %v836_v19  ;;  %v818_v28 = vld [vmem:[#allocation2 + $0x30] sm:$0xf]  ;;  %vm693_vm5 = vcmask 64512  }
  0x19   : > { %v319_v3 = vpack.c.bf16 %v318_v2, %v317_v1  ;;  %v826_v22 = vld [vmem:[#allocation2 + $0x40] sm:$0xf]  ;;  %v932_v23 = vld [vmem:[#allocation2 + $0x44] sm:$0xf0]  ;;  %v931_v24 = vld [vmem:[#allocation2 + $0x44] sm:$0xf] }
  0x1a   : > { %456 = vmatpush.bf16.msra.mxu1 %v843_v14  ;;  %v828_v25 = vld [vmem:[#allocation2 + $0x48] sm:$0xf0]  ;;  %v827_v26 = vor.u32 %v932_v23, %v826_v22  ;;  %v930_v29 = vld [vmem:[#allocation2 + $0x34] sm:$0xf0]  ;;  %v929_v30 = vld [vmem:[#allocation2 + $0x34] sm:$0xf] }
  0x1b   : > { %791 = vmatmul.msk.bf16.vlgmr.msra.gmra.mxu0 %vm332_vm0, %v319_v3  ;;  %470 = vmatpush.bf16.msra.mxu2 %v847_v15  ;;  %v831_v27 = vor.u32 %v931_v24, %v828_v25  ;;  %v819_v31 = vor.u32 %v930_v29, %v818_v28  ;;  %v820_v32 = vld [vmem:[#allocation2 + $0x38] sm:$0xf0]  ;;  %v810_v34 = vld [vmem:[#allocation2 + $0x20] sm:$0xf]  ;;  %v928_v35 = vld [vmem:[#allocation2 + $0x24] sm:$0xf0] }
  0x1c   : > { %v823_v33 = vor.u32 %v929_v30, %v820_v32  ;;  %v927_v36 = vld [vmem:[#allocation2 + $0x24] sm:$0xf]  ;;  %v811_v37 = vor.u32 %v928_v35, %v810_v34  ;;  %v812_v38 = vld [vmem:[#allocation2 + $0x28] sm:$0xf0]  ;;  %v802_v40 = vld [vmem:[#allocation2 + $0x10] sm:$0xf] }
  0x1d   : > { %v815_v39 = vor.u32 %v927_v36, %v812_v38  ;;  %v926_v41 = vld [vmem:[#allocation2 + $0x14] sm:$0xf0]  ;;  %v925_v42 = vld [vmem:[#allocation2 + $0x14] sm:$0xf]  ;;  %v804_v44 = vld [vmem:[#allocation2 + $0x18] sm:$0xf0] }
  0x1e   : > { %457 = vmatpush.bf16.msra.mxu1 %v835_v20  ;;  %v803_v43 = vor.u32 %v926_v41, %v802_v40  ;;  %v807_v45 = vor.u32 %v925_v42, %v804_v44  ;;  %v794_v46 = vld [vmem:[#allocation2] sm:$0xf]  ;;  %v924_v47 = vld [vmem:[#allocation2 + $0x4] sm:$0xf0]  ;;  %v923_v48 = vld [vmem:[#allocation2 + $0x4] sm:$0xf] }
  0x1f   : > { %471 = vmatpush.bf16.msra.mxu2 %v839_v21  ;;  %v795_v49 = vor.u32 %v924_v47, %v794_v46  ;;  %v796_v50 = vld [vmem:[#allocation2 + $0x8] sm:$0xf0]  ;;  %v945_v54 = vld [vmem:[#allocation4 + $0x30] sm:$0xff]  ;;  %v988_v60 = vld [vmem:[%s1188_s2] ss:$0 sm:$0xff] }
  0x20   : > { %v799_v51 = vor.u32 %v923_v48, %v796_v50  ;;  %v953_v55 = vld [vmem:[#allocation4 + $0x70] sm:$0xff]  ;;  %622 = vmatpush.bf16.msra.mxu3 %v945_v54  ;;  %v952_v57 = vld [vmem:[#allocation4 + $0x68] sm:$0xff]  ;;  %v942_v3 = vld [vmem:[#allocation4 + $0x18] sm:$0xff] }
  0x21   : > { %636 = vmatpush.bf16.msrb.mxu0 %v953_v55  ;;  %v951_v4 = vld [vmem:[#allocation4 + $0x60] sm:$0xff]  ;;  %v941_v5 = vld [vmem:[#allocation4 + $0x10] sm:$0xff]  ;;  %v950_v6 = vld [vmem:[#allocation4 + $0x58] sm:$0xff] }
  0x22   : > { %458 = vmatpush.bf16.msra.mxu1 %v827_v26  ;;  %v940_v7 = vld [vmem:[#allocation4 + $0x8] sm:$0xff]  ;;  %v949_v8 = vld [vmem:[#allocation4 + $0x50] sm:$0xff]  ;;  %v939_v9 = vld [vmem:[#allocation4] sm:$0xff] }
  0x23   : > { %472 = vmatpush.bf16.msra.mxu2 %v831_v27  ;;  %v948_v10 = vld [vmem:[#allocation4 + $0x48] sm:$0xff]  ;;  %v947_v11 = vld [vmem:[#allocation4 + $0x40] sm:$0xff] }
  0x24   : > { %623 = vmatpush.bf16.msra.mxu3 %v944_v56  ;;  %v369_v12 = vld [vmem:[%s1190_s4] sm:$0x3] }
  0x25   : > { %637 = vmatpush.bf16.msrb.mxu0 %v952_v57  ;;  %v371_v14 = vperm.slane %v369_v12, 0  ;;  %v372_v18 = vperm.slane %v369_v12, 1  ;;  %v989_v29 = vld [vmem:[%s1192_s6] ss:$0 sm:$0xff] }
  0x26   : > { %459 = vmatpush.bf16.msra.mxu1 %v819_v31 }
  0x27   : > { %473 = vmatpush.bf16.msra.mxu2 %v823_v33 }
  0x28   : > { %624 = vmatpush.bf16.msra.mxu3 %v943_v58 }
  0x29   : > { %638 = vmatpush.bf16.msrb.mxu0 %v951_v4 }
  0x2a   : > { %460 = vmatpush.bf16.msra.mxu1 %v811_v37 }
  0x2b   : > { %474 = vmatpush.bf16.msra.mxu2 %v815_v39 }
  0x2c   : > { %625 = vmatpush.bf16.msra.mxu3 %v942_v3 }
  0x2d   : > { %639 = vmatpush.bf16.msrb.mxu0 %v950_v6 }
  0x2e   : > { %461 = vmatpush.bf16.msra.mxu1 %v803_v43 }
  0x2f   : > { %475 = vmatpush.bf16.msra.mxu2 %v807_v45 }
  0x30   : > { %626 = vmatpush.bf16.msra.mxu3 %v941_v5 }
  0x31   : > { %640 = vmatpush.bf16.msrb.mxu0 %v949_v8 }
  0x32   : > { %462 = vmatpush.bf16.msra.mxu1 %v795_v49 }
  0x33   : > { %476 = vmatpush.bf16.msra.mxu2 %v799_v51 }
  0x34   : > { %627 = vmatpush.bf16.msra.mxu3 %v940_v7 }
  0x35   : > { %641 = vmatpush.bf16.msrb.mxu0 %v948_v10 }
  0x38   : > { %628 = vmatpush.bf16.msra.mxu3 %v939_v9 }
  0x39   : > { %642 = vmatpush.bf16.msrb.mxu0 %v947_v11 }
  0x98   : > { %v345_v59 = vpop.f32.mrf.mxu0 }
  0x99   : > { %v346_v61 = vadd.f32 %v988_v60, %v345_v59 }
  0x9b   : > { %v350_v0 = vmax.f32 %v346_v61, 0.0 }
  0xa0   : > { %v347_v62 = vpop.f32.mrf.mxu0 }
  0xa1   : > { %v348_v63 = vadd.f32 %v988_v60, %v347_v62 }
  0xa3   : > { %v351_v1 = vmax.f32 %v348_v63, 0.0 }
  0xa5   : > { %v352_v2 = vpack.c.bf16 %v351_v1, %v350_v0 }
  0xa7   : > { %463 = vmatmul.bf16.vlgmr.msra.gmra.mxu1 %v352_v2  ;;  %477 = vmatmul.bf16.vlgmr.msra.gmra.mxu2 %v352_v2 }
 0x124   : > { %v464_v13 = vpop.f32.mrf.mxu1 }
 0x125   : > { %v465_v16 = vadd.f32 %v464_v13, %v371_v14 }
 0x127   : > { %v483_v20 = vmax.f32 %v465_v16, 0.0 }
 0x12a   : > { %v478_v15 = vpop.f32.mrf.mxu2 }
 0x12b   : > { %v479_v22 = vadd.f32 %v478_v15, %v372_v18 }
 0x12c   : > { %v466_v17 = vpop.f32.mrf.mxu1 }
 0x12d   : > { %v467_v19 = vadd.f32 %v466_v17, %v371_v14  ;;  %v484_v26 = vmax.f32 %v479_v22, 0.0 }
 0x12f   : > { %v485_v21 = vmax.f32 %v467_v19, 0.0 }
 0x131   : > { %v487_v23 = vpack.c.bf16 %v485_v21, %v483_v20 }
 0x132   : > { %v480_v24 = vpop.f32.mrf.mxu2 }
 0x133   : > { %v481_v25 = vadd.f32 %v480_v24, %v372_v18  ;;  %629 = vmatmul.bf16.vlgmr.msra.gmra.mxu3 %v487_v23 }
 0x135   : > { %v486_v27 = vmax.f32 %v481_v25, 0.0 }
 0x137   : > { %v488_v28 = vpack.c.bf16 %v486_v27, %v484_v26 }
 0x139   : > { %643 = vmatmul.bf16.vlgmr.msrb.gmra.mxu0 %v488_v28 }
 0x1b6   : > { %v630_v30 = vpop.f32.mrf.mxu3  ;;  %v644_v31 = vpop.f32.mrf.mxu0 }
 0x1b7   : > { %v631_v32 = vadd.f32 %v989_v29, %v630_v30 }
 0x1b9   : > { %v645_v33 = vadd.f32 %v644_v31, %v631_v32 }
 0x1bb   : > { %649 = vmax.xlane.f32.xlu0 %v645_v33 }
 0x1be   : > { %v632_v34 = vpop.f32.mrf.mxu3  ;;  %v646_v36 = vpop.f32.mrf.mxu0 }
 0x1bf   : > { %v633_v35 = vadd.f32 %v989_v29, %v632_v34 }
 0x1c1   : > { %v647_v37 = vadd.f32 %v646_v36, %v633_v35 }
 0x1c3   : > { %651 = vmax.xlane.f32.xlu0 %v647_v37 }
 0x22e   : > { %v650_v38 = vpop.xlane.xlu0 %649 }
 0x22f   : > { %v653_v39 = vsub.f32 %v645_v33, %v650_v38 }
 0x231   : > { %v655_v40 = vmul.f32 1.442695, %v653_v39 }
 0x233   : > { %990 = vpow2.f32 %v655_v40 }
 0x236   : > { %v652_v41 = vpop.xlane.xlu0 %651 }
 0x237   : > { %v654_v42 = vsub.f32 %v647_v37, %v652_v41 }
 0x239   : > { %v991_v43 = vpop.eup %990  ;;  %v657_v44 = vmul.f32 1.442695, %v654_v42 }
 0x23a   : > { %659 = vadd.xlane.f32.xlu1 %v991_v43 }
 0x23b   : > { %992 = vpow2.f32 %v657_v44 }
 0x241   : > { %v993_v45 = vpop.eup %992 }
 0x242   : > { %661 = vadd.xlane.f32.xlu1 %v993_v45 }
 0x2ad   : > { %v660_v46 = vpop.xlane.xlu1 %659 }
 0x2ae   : > { %994 = vrcp.f32 %v660_v46  ;;  %v674_v51 = vand.u32 2147483648, %v660_v46  ;;  %v672_v53 = vand.u32 2147483647, %v660_v46  ;;  %vm668_vm2 = vweird.f32 %v660_v46 }
 0x2b0   : > { %v675_v56 = vor.u32 1.1754944e-38, %v674_v51  ;;  %vm673_vm4 = vcmp.eq.f32.partialorder %v672_v53, 8.507059e+37 }
 0x2b4   : > { %v995_v47 = vpop.eup %994 }
 0x2b5   : > { %v664_v48 = vmul.f32 %v995_v47, %v660_v46  ;;  %v662_v49 = vpop.xlane.xlu1 %661  ;;  %vm669_vm1 = vweird.f32 %v995_v47 }
 0x2b6   : > { %996 = vrcp.f32 %v662_v49  ;;  %vm670_vm3 = vmor %vm668_vm2, %vm669_vm1  ;;  %v689_v62 = vand.u32 2147483648, %v662_v49  ;;  %v687_v0 = vand.u32 2147483647, %v662_v49  ;;  %vm683_vm7 = vweird.f32 %v662_v49 }
 0x2b7   : > { %v665_v50 = vsub.f32 1.0, %v664_v48 }
 0x2b8   : > { %v690_v2 = vor.u32 1.1754944e-38, %v689_v62  ;;  %vm688_vm9 = vcmp.eq.f32.partialorder %v687_v0, 8.507059e+37 }
 0x2b9   : > { %v666_v52 = vmul.f32 %v995_v47, %v665_v50 }
 0x2bb   : > { %v667_v54 = vadd.f32 %v995_v47, %v666_v52 }
 0x2bc   : > { %v997_v55 = vpop.eup %996 }
 0x2bd   : > { %v671_v57 = vsel %vm670_vm3, %v995_v47, %v667_v54  ;;  %v679_v58 = vmul.f32 %v997_v55, %v662_v49  ;;  %vm684_vm6 = vweird.f32 %v997_v55 }
 0x2be   : > { %v676_v59 = vsel %vm673_vm4, %v675_v56, %v671_v57  ;;  %vm685_vm8 = vmor %vm683_vm7, %vm684_vm6 }
 0x2bf   : > { %v677_v60 = vmul.f32 %v991_v43, %v676_v59  ;;  %v680_v61 = vsub.f32 1.0, %v679_v58 }
 0x2c1   : > { %694 = vst.msk [vmem:[%s314_s12] sm:$0xff] %vm693_vm5, %v677_v60  ;;  %v681_v63 = vmul.f32 %v997_v55, %v680_v61 }
 0x2c3   : > { %v682_v1 = vadd.f32 %v997_v55, %v681_v63 }
 0x2c5   : > { %v686_v3 = vsel %vm685_vm8, %v997_v55, %v682_v1 }
 0x2c6   : > { %v691_v4 = vsel %vm688_vm9, %v690_v2, %v686_v3 }
 0x2c7   : > { %v692_v5 = vmul.f32 %v993_v45, %v691_v4 }
 0x2c9   : > { %695 = vst.msk [vmem:[%s314_s12 + $0x8] sm:$0xff] %vm693_vm5, %v692_v5 }
 0x2ca PF: > { %s19_s24 = sadd.s32 1, %s1072_s24  }
 0x2cb   : > { %p16_p7 = scmp.ge.s32.totalorder %s19_s24, 5  }
 0x2cd   :  { %18 = sbr.rel (!%p16_p7) target bundleno = 2 (0x2), region = 87 }
 0x2d2   :  { %718 = vsyncpa [#allocation3], 1 }
 0x2d3   :  { %720 = vsyncpa [#allocation3 + $0x1], 1 }
 0x2d4   :  { %721 = vsyncpa [#allocation5], 1 }

</bundles_post_ra>
